<compile_context>
chip_gen: v5e
topology: v5e:2x2
jax: 0.10.0
libtpu: 0.0.40
codegen_flags: <defaults>
</compile_context>

<pallas_src>
import functools

import jax
import jax.numpy as jnp
from jax.experimental import pallas as pl
from jax.experimental.pallas import tpu as pltpu

_EPS = 1e-5


# --------------------------------------------------------------------------
# Kernels
# --------------------------------------------------------------------------
def _adabn_resident_kernel(x_ref, gamma_ref, beta_ref, o_ref, *, unroll):
    """Single-pass-over-HBM kernel: whole (N, TC, HW) channel block resident.

    x_ref / o_ref: (N, TC, HW) in the I/O dtype.
    gamma_ref / beta_ref: (TC, 1) float32.
    """
    n, tc, hw = x_ref.shape
    inv_count = 1.0 / float(n * hw)

    # Pass 1: per-channel mean, f32 accumulation one batch-slab at a time so a
    # full-block f32 copy of x is never materialized in VMEM.
    def _sum_body(i, acc):
        xs = x_ref[i].astype(jnp.float32)                 # (TC, HW)
        return acc + jnp.sum(xs, axis=1, keepdims=True)   # (TC, 1)

    s = jax.lax.fori_loop(0, n, _sum_body,
                          jnp.zeros((tc, 1), jnp.float32), unroll=unroll)
    mean = s * inv_count

    # Pass 2: centered second moment (robust vs. E[x^2]-mean^2 cancellation).
    def _m2_body(i, acc):
        xc = x_ref[i].astype(jnp.float32) - mean
        return acc + jnp.sum(xc * xc, axis=1, keepdims=True)

    m2 = jax.lax.fori_loop(0, n, _m2_body,
                           jnp.zeros((tc, 1), jnp.float32), unroll=unroll)
    var = m2 * inv_count                                   # biased (BN training mode)
    inv_std = jax.lax.rsqrt(var + _EPS)

    scale = gamma_ref[...] * inv_std                       # (TC, 1)
    shift = beta_ref[...] - mean * scale                   # (TC, 1)

    # Pass 3: normalize, re-reading the narrow-dtype block from VMEM slab by
    # slab (no stored f32 copy; only the output store hits the vst slot).
    def _norm_body(i, carry):
        xs = x_ref[i].astype(jnp.float32)
        o_ref[i] = (xs * scale + shift).astype(o_ref.dtype)
        return carry

    jax.lax.fori_loop(0, n, _norm_body, 0, unroll=unroll)


def _adabn_stats_kernel(x_ref, mean_ref, var_ref, *, n_batch):
    """Fallback pass 1: per-channel mean/var with Chan-style streaming combine.

    x_ref: (1, TC, HW).  mean_ref / var_ref: (TC, 1) f32 output blocks that are
    resident across the batch grid axis (same block index for every n) and act
    as accumulators; var_ref holds the running centered M2 until finalize.
    """
    n_idx = pl.program_id(1)
    hw = x_ref.shape[2]

    xs = x_ref[0].astype(jnp.float32)                          # (TC, HW)
    slab_mean = jnp.sum(xs, axis=1, keepdims=True) * (1.0 / float(hw))
    xc = xs - slab_mean
    slab_m2 = jnp.sum(xc * xc, axis=1, keepdims=True)

    @pl.when(n_idx == 0)
    def _():
        mean_ref[...] = slab_mean
        var_ref[...] = slab_m2

    @pl.when(n_idx > 0)
    def _():
        # Chan's parallel combine with equal chunk sizes (HW elements each).
        nf = n_idx.astype(jnp.float32)
        delta = slab_mean - mean_ref[...]
        mean_ref[...] = mean_ref[...] + delta / (nf + 1.0)
        var_ref[...] = (var_ref[...] + slab_m2
                        + (delta * delta) * (float(hw) * nf / (nf + 1.0)))

    @pl.when(n_idx == n_batch - 1)
    def _():
        var_ref[...] = var_ref[...] * (1.0 / float(n_batch * hw))


def _adabn_norm_kernel(x_ref, scale_ref, shift_ref, o_ref):
    """Fallback pass 2: y = x * scale + shift with pre-folded scale/shift."""
    xs = x_ref[0].astype(jnp.float32)
    o_ref[0] = (xs * scale_ref[...] + shift_ref[...]).astype(o_ref.dtype)


# --------------------------------------------------------------------------
# Tiling / budget helpers
# --------------------------------------------------------------------------
def _sublane_align(itemsize):
    # f32 -> 8, bf16 -> 16, int8/fp8 -> 32 sublanes per packed vreg.
    return 8 * max(1, 4 // int(itemsize))


def _default_vmem_budget():
    # ~1/3 of physical VMEM (=> ~21 MiB on v7x's 64 MiB, ~40 MiB on 128 MiB
    # chips), so the limit below always stays well under physical VMEM.
    try:
        cap = int(getattr(pltpu.get_tpu_info(), "vmem_capacity_bytes", 64 << 20))
    except Exception:  # pragma: no cover - conservative fallback
        cap = 64 << 20
    return int(max(8 << 20, min(cap // 3, 40 << 20)))


def _choose_resident_tile(C, N, HW, itemsize, budget, align):
    """Largest channel tile whose working set fits `budget`, or None when even
    a minimal aligned tile does not fit (-> two-pass fallback).

    Per-channel working set: in + out blocks, each double-buffered
    (4*N*HW*itemsize), plus ~3 live f32 batch-slabs of intermediates (12*HW B)
    from the slab-wise reduce/normalize loops."""
    per_chan = 4 * N * HW * itemsize + 12 * HW
    max_tc = budget // per_chan
    if max_tc >= C:
        tc = C
    elif max_tc >= align:
        tc = (max_tc // align) * align
    else:
        return None

    def _block_bytes(t):
        return t * N * HW * itemsize

    def _shrink(t):
        t2 = ((t // 2) // align) * align
        return t2 if t2 >= align else t

    # Prefer >= 4 grid steps so HBM<->VMEM DMAs pipeline, and an even count so
    # v7x megacore (2 TCs over the 'parallel' axis) balances; never shrink a
    # block below ~1 MiB.
    steps = pl.cdiv(C, tc)
    while steps < 4 and tc > align:
        t2 = _shrink(tc)
        if t2 >= tc or _block_bytes(t2) < (1 << 20):
            break
        tc, steps = t2, pl.cdiv(C, t2)
    if steps > 1 and steps % 2 == 1 and tc > align:
        t2 = _shrink(tc)
        if t2 < tc and _block_bytes(t2) >= (1 << 20) and pl.cdiv(C, t2) % 2 == 0:
            tc = t2
    return int(tc)


def _choose_fallback_tile(C, HW, itemsize, budget, align):
    # One batch-slab per grid step: in + out double-buffered + ~4 f32 temps.
    per_chan = 4 * HW * itemsize + 16 * HW
    max_tc = budget // per_chan
    if max_tc >= C:
        return int(C)
    if max_tc >= align:
        return int((max_tc // align) * align)
    return int(min(C, align))   # last resort; still correct, may spill


# --------------------------------------------------------------------------
# Wrappers
# --------------------------------------------------------------------------
def _adabn_resident(x, g, b, *, tc):
    N, C, HW = x.shape
    itemsize = jnp.dtype(x.dtype).itemsize
    grid = (pl.cdiv(C, tc),)

    needed = 4 * tc * N * HW * itemsize + 3 * tc * HW * 4 + 2 * C * 4
    vmem_limit = int(min(max(needed + (2 << 20), 16 << 20), 48 << 20))

    kernel = functools.partial(_adabn_resident_kernel, unroll=(N <= 8))
    cost = pl.CostEstimate(
        flops=6 * N * C * HW,
        transcendentals=C,
        bytes_accessed=2 * N * C * HW * itemsize + 2 * C * 4,
    )
    return pl.pallas_call(
        kernel,
        out_shape=jax.ShapeDtypeStruct((N, C, HW), x.dtype),
        grid=grid,
        in_specs=[
            pl.BlockSpec((N, tc, HW), lambda c: (0, c, 0)),   # x
            pl.BlockSpec((tc, 1), lambda c: (c, 0)),          # gamma (f32)
            pl.BlockSpec((tc, 1), lambda c: (c, 0)),          # beta  (f32)
        ],
        out_specs=pl.BlockSpec((N, tc, HW), lambda c: (0, c, 0)),
        compiler_params=pltpu.CompilerParams(
            dimension_semantics=("parallel",),
            vmem_limit_bytes=vmem_limit,
        ),
        cost_estimate=cost,
    )(x, g, b)


def _adabn_two_pass(x, g, b, *, budget, align):
    """Fallback for channel footprints too large for a resident block:
    stats kernel over a (C_blocks, N) grid with accumulator outputs, then a
    separate normalize kernel (~1.5x HBM traffic vs. the resident path)."""
    N, C, HW = x.shape
    itemsize = jnp.dtype(x.dtype).itemsize
    tc = _choose_fallback_tile(C, HW, itemsize, budget, align)
    grid = (pl.cdiv(C, tc), N)

    slab_bytes = tc * HW * itemsize
    stats_limit = int(min(max(2 * slab_bytes + 4 * tc * HW * 4 + (2 << 20), 16 << 20), 48 << 20))
    norm_limit = int(min(max(4 * slab_bytes + 2 * tc * HW * 4 + (2 << 20), 16 << 20), 48 << 20))

    stats_kernel = functools.partial(_adabn_stats_kernel, n_batch=N)
    mean, var = pl.pallas_call(
        stats_kernel,
        out_shape=(jax.ShapeDtypeStruct((C, 1), jnp.float32),
                   jax.ShapeDtypeStruct((C, 1), jnp.float32)),
        grid=grid,
        in_specs=[pl.BlockSpec((1, tc, HW), lambda c, n: (n, c, 0))],
        out_specs=(pl.BlockSpec((tc, 1), lambda c, n: (c, 0)),
                   pl.BlockSpec((tc, 1), lambda c, n: (c, 0))),
        compiler_params=pltpu.CompilerParams(
            dimension_semantics=("parallel", "arbitrary"),
            vmem_limit_bytes=stats_limit,
        ),
        cost_estimate=pl.CostEstimate(
            flops=5 * N * C * HW, transcendentals=0,
            bytes_accessed=N * C * HW * itemsize + 2 * C * 4),
    )(x)

    # Fold gamma/beta + stats into per-channel scale/shift on the host (tiny).
    inv_std = jax.lax.rsqrt(var + _EPS)
    scale = g * inv_std
    shift = b - mean * scale

    return pl.pallas_call(
        _adabn_norm_kernel,
        out_shape=jax.ShapeDtypeStruct((N, C, HW), x.dtype),
        grid=grid,
        in_specs=[
            pl.BlockSpec((1, tc, HW), lambda c, n: (n, c, 0)),
            pl.BlockSpec((tc, 1), lambda c, n: (c, 0)),
            pl.BlockSpec((tc, 1), lambda c, n: (c, 0)),
        ],
        out_specs=pl.BlockSpec((1, tc, HW), lambda c, n: (n, c, 0)),
        compiler_params=pltpu.CompilerParams(
            dimension_semantics=("parallel", "parallel"),
            vmem_limit_bytes=norm_limit,
        ),
        cost_estimate=pl.CostEstimate(
            flops=2 * N * C * HW, transcendentals=0,
            bytes_accessed=2 * N * C * HW * itemsize + 2 * C * 4),
    )(x, scale, shift)


def adabn_forward(x_nchw, gamma, beta, *, vmem_budget_bytes=None):
    """AdaBn forward: BatchNorm2d with on-the-fly batch statistics.

    x_nchw: (N, C, H, W) float32 (or bf16);  gamma, beta: (C,)
    returns: same shape/dtype as x_nchw.
    """
    N, C, H, W = x_nchw.shape
    HW = H * W
    itemsize = int(jnp.dtype(x_nchw.dtype).itemsize)
    align = _sublane_align(itemsize)
    budget = _default_vmem_budget() if vmem_budget_bytes is None else int(vmem_budget_bytes)

    # Adjacent-dim merge: no transpose, no extra HBM traffic.
    x = x_nchw.reshape(N, C, HW)
    g = gamma.reshape(C, 1).astype(jnp.float32)
    b = beta.reshape(C, 1).astype(jnp.float32)

    tc = _choose_resident_tile(C, N, HW, itemsize, budget, align)
    if tc is not None:
        out = _adabn_resident(x, g, b, tc=tc)
    else:
        out = _adabn_two_pass(x, g, b, budget=budget, align=align)
    return out.reshape(N, C, H, W)


def _adabn_ref(x_nchw, gamma, beta):
    """Pure-JAX reference matching PyTorch BatchNorm2d in training mode."""
    xf = x_nchw.astype(jnp.float32)
    mean = jnp.mean(xf, axis=(0, 2, 3), keepdims=True)
    var = jnp.mean((xf - mean) ** 2, axis=(0, 2, 3), keepdims=True)
    g = gamma.reshape(1, -1, 1, 1).astype(jnp.float32)
    b = beta.reshape(1, -1, 1, 1).astype(jnp.float32)
    y = (xf - mean) * jax.lax.rsqrt(var + _EPS) * g + b
    return y.astype(x_nchw.dtype)


if __name__ == "__main__":
    key = jax.random.PRNGKey(0)
    k_x, k_g, k_b = jax.random.split(key, 3)

    N, C, H, W = 2, 4, 16, 16
    x = jax.random.normal(k_x, (N, C, H, W), dtype=jnp.float32) * 2.0 + 0.5
    # BatchNorm2d default init is gamma=1, beta=0; perturb to exercise affine.
    gamma = 1.0 + 0.1 * jax.random.normal(k_g, (C,), dtype=jnp.float32)
    beta = 0.1 * jax.random.normal(k_b, (C,), dtype=jnp.float32)

    ref = _adabn_ref(x, gamma, beta)

    # Main (resident channel-block) path.
    out = jax.block_until_ready(adabn_forward(x, gamma, beta))
    assert out.shape == (N, C, H, W)
    assert jnp.allclose(out, ref, atol=1e-4, rtol=1e-4)

    # Force the two-pass fallback path (tiny budget) to exercise its kernels.
    out_fb = jax.block_until_ready(adabn_forward(x, gamma, beta, vmem_budget_bytes=4096))
    assert jnp.allclose(out_fb, ref, atol=1e-4, rtol=1e-4)

    # TODO(synk): the wrapped `model` backbone is unspecified in AdaBn; only the
    # BatchNorm-with-batch-stats hot path (the part AdaBn changes) is kernelized.
    print("KERNEL_OK")
</pallas_src>

<mosaic_0001>
module attributes {stable_mosaic.version = 11 : i64} {
  func.func @_adabn_resident_kernel(%arg0: i32, %arg1: memref<2x4x256xf32, #tpu.memory_space<vmem>>, %arg2: memref<4x1xf32, #tpu.memory_space<vmem>>, %arg3: memref<4x1xf32, #tpu.memory_space<vmem>>, %arg4: memref<2x4x256xf32, #tpu.memory_space<vmem>>) attributes {dimension_semantics = [#tpu.dimension_semantics<parallel>], iteration_bounds = array<i64: 1>, scalar_prefetch = 0 : i64, scratch_operands = 0 : i64, tpu.core_type = #tpu.core_type<tc>, window_params = [{transform_indices = @transform_0, window_bounds = array<i64: 2, 4, 256>}, {transform_indices = @transform_1, window_bounds = array<i64: 4, 1>}, {transform_indices = @transform_2, window_bounds = array<i64: 4, 1>}, {transform_indices = @transform_3, window_bounds = array<i64: 2, 4, 256>}]} {
    %cst = arith.constant 0.000000e+00 : f32
    %0 = vector.broadcast %cst : f32 to vector<4x1xf32>
    %c0_i32 = arith.constant 0 : i32
    %1 = arith.index_cast %c0_i32 : i32 to index
    %c0 = arith.constant 0 : index
    %c0_0 = arith.constant 0 : index
    %2 = vector.load %arg1[%1, %c0, %c0_0] : memref<2x4x256xf32, #tpu.memory_space<vmem>>, vector<1x4x256xf32>
    %3 = vector.shape_cast %2 : vector<1x4x256xf32> to vector<4x256xf32>
    %cst_1 = arith.constant dense<0.000000e+00> : vector<4xf32>
    %4 = vector.multi_reduction <add>, %3, %cst_1 [1] : vector<4x256xf32> to vector<4xf32>
    %5 = vector.shape_cast %4 : vector<4xf32> to vector<4x1xf32>
    %6 = arith.addf %0, %5 : vector<4x1xf32>
    %c1_i32 = arith.constant 1 : i32
    %7 = arith.index_cast %c1_i32 : i32 to index
    %c0_2 = arith.constant 0 : index
    %c0_3 = arith.constant 0 : index
    %8 = vector.load %arg1[%7, %c0_2, %c0_3] : memref<2x4x256xf32, #tpu.memory_space<vmem>>, vector<1x4x256xf32>
    %9 = vector.shape_cast %8 : vector<1x4x256xf32> to vector<4x256xf32>
    %cst_4 = arith.constant dense<0.000000e+00> : vector<4xf32>
    %10 = vector.multi_reduction <add>, %9, %cst_4 [1] : vector<4x256xf32> to vector<4xf32>
    %11 = vector.shape_cast %10 : vector<4xf32> to vector<4x1xf32>
    %12 = arith.addf %6, %11 : vector<4x1xf32>
    %c2_i32 = arith.constant 2 : i32
    %cst_5 = arith.constant 0.001953125 : f32
    %13 = vector.broadcast %cst_5 : f32 to vector<4x1xf32>
    %14 = arith.mulf %12, %13 : vector<4x1xf32>
    %cst_6 = arith.constant 0.000000e+00 : f32
    %15 = vector.broadcast %cst_6 : f32 to vector<4x1xf32>
    %c0_i32_7 = arith.constant 0 : i32
    %16 = arith.index_cast %c0_i32_7 : i32 to index
    %c0_8 = arith.constant 0 : index
    %c0_9 = arith.constant 0 : index
    %17 = vector.load %arg1[%16, %c0_8, %c0_9] : memref<2x4x256xf32, #tpu.memory_space<vmem>>, vector<1x4x256xf32>
    %18 = vector.shape_cast %17 : vector<1x4x256xf32> to vector<4x256xf32>
    %19 = vector.broadcast %14 : vector<4x1xf32> to vector<4x256xf32>
    %20 = arith.subf %18, %19 : vector<4x256xf32>
    %21 = arith.mulf %20, %20 : vector<4x256xf32>
    %cst_10 = arith.constant dense<0.000000e+00> : vector<4xf32>
    %22 = vector.multi_reduction <add>, %21, %cst_10 [1] : vector<4x256xf32> to vector<4xf32>
    %23 = vector.shape_cast %22 : vector<4xf32> to vector<4x1xf32>
    %24 = arith.addf %15, %23 : vector<4x1xf32>
    %c1_i32_11 = arith.constant 1 : i32
    %25 = arith.index_cast %c1_i32_11 : i32 to index
    %c0_12 = arith.constant 0 : index
    %c0_13 = arith.constant 0 : index
    %26 = vector.load %arg1[%25, %c0_12, %c0_13] : memref<2x4x256xf32, #tpu.memory_space<vmem>>, vector<1x4x256xf32>
    %27 = vector.shape_cast %26 : vector<1x4x256xf32> to vector<4x256xf32>
    %28 = vector.broadcast %14 : vector<4x1xf32> to vector<4x256xf32>
    %29 = arith.subf %27, %28 : vector<4x256xf32>
    %30 = arith.mulf %29, %29 : vector<4x256xf32>
    %cst_14 = arith.constant dense<0.000000e+00> : vector<4xf32>
    %31 = vector.multi_reduction <add>, %30, %cst_14 [1] : vector<4x256xf32> to vector<4xf32>
    %32 = vector.shape_cast %31 : vector<4xf32> to vector<4x1xf32>
    %33 = arith.addf %24, %32 : vector<4x1xf32>
    %c2_i32_15 = arith.constant 2 : i32
    %cst_16 = arith.constant 0.001953125 : f32
    %34 = vector.broadcast %cst_16 : f32 to vector<4x1xf32>
    %35 = arith.mulf %33, %34 : vector<4x1xf32>
    %cst_17 = arith.constant 9.99999974E-6 : f32
    %36 = vector.broadcast %cst_17 : f32 to vector<4x1xf32>
    %37 = arith.addf %35, %36 : vector<4x1xf32>
    %38 = math.rsqrt %37 : vector<4x1xf32>
    %c0_18 = arith.constant 0 : index
    %c0_19 = arith.constant 0 : index
    %39 = vector.load %arg2[%c0_18, %c0_19] : memref<4x1xf32, #tpu.memory_space<vmem>>, vector<4x1xf32>
    %40 = arith.mulf %39, %38 : vector<4x1xf32>
    %c0_20 = arith.constant 0 : index
    %c0_21 = arith.constant 0 : index
    %41 = vector.load %arg3[%c0_20, %c0_21] : memref<4x1xf32, #tpu.memory_space<vmem>>, vector<4x1xf32>
    %42 = arith.mulf %14, %40 : vector<4x1xf32>
    %43 = arith.subf %41, %42 : vector<4x1xf32>
    %c0_i32_22 = arith.constant 0 : i32
    %44 = arith.index_cast %c0_i32_22 : i32 to index
    %c0_23 = arith.constant 0 : index
    %c0_24 = arith.constant 0 : index
    %45 = vector.load %arg1[%44, %c0_23, %c0_24] : memref<2x4x256xf32, #tpu.memory_space<vmem>>, vector<1x4x256xf32>
    %46 = vector.shape_cast %45 : vector<1x4x256xf32> to vector<4x256xf32>
    %47 = vector.broadcast %40 : vector<4x1xf32> to vector<4x256xf32>
    %48 = arith.mulf %46, %47 : vector<4x256xf32>
    %49 = vector.broadcast %43 : vector<4x1xf32> to vector<4x256xf32>
    %50 = arith.addf %48, %49 : vector<4x256xf32>
    %51 = arith.index_cast %c0_i32_22 : i32 to index
    %c0_25 = arith.constant 0 : index
    %c0_26 = arith.constant 0 : index
    %52 = vector.load %arg4[%51, %c0_25, %c0_26] : memref<2x4x256xf32, #tpu.memory_space<vmem>>, vector<1x4x256xf32>
    %53 = vector.shape_cast %52 : vector<1x4x256xf32> to vector<4x256xf32>
    %54 = vector.shape_cast %50 : vector<4x256xf32> to vector<1x4x256xf32>
    tpu.vector_store %arg4[%51, %c0_25, %c0_26], %54 {strides = array<i32>} : memref<2x4x256xf32, #tpu.memory_space<vmem>>, vector<1x4x256xf32>,
    %c1_i32_27 = arith.constant 1 : i32
    %55 = arith.index_cast %c1_i32_27 : i32 to index
    %c0_28 = arith.constant 0 : index
    %c0_29 = arith.constant 0 : index
    %56 = vector.load %arg1[%55, %c0_28, %c0_29] : memref<2x4x256xf32, #tpu.memory_space<vmem>>, vector<1x4x256xf32>
    %57 = vector.shape_cast %56 : vector<1x4x256xf32> to vector<4x256xf32>
    %58 = vector.broadcast %40 : vector<4x1xf32> to vector<4x256xf32>
    %59 = arith.mulf %57, %58 : vector<4x256xf32>
    %60 = vector.broadcast %43 : vector<4x1xf32> to vector<4x256xf32>
    %61 = arith.addf %59, %60 : vector<4x256xf32>
    %62 = arith.index_cast %c1_i32_27 : i32 to index
    %c0_30 = arith.constant 0 : index
    %c0_31 = arith.constant 0 : index
    %63 = vector.load %arg4[%62, %c0_30, %c0_31] : memref<2x4x256xf32, #tpu.memory_space<vmem>>, vector<1x4x256xf32>
    %64 = vector.shape_cast %63 : vector<1x4x256xf32> to vector<4x256xf32>
    %65 = vector.shape_cast %61 : vector<4x256xf32> to vector<1x4x256xf32>
    tpu.vector_store %arg4[%62, %c0_30, %c0_31], %65 {strides = array<i32>} : memref<2x4x256xf32, #tpu.memory_space<vmem>>, vector<1x4x256xf32>,
    %c2_i32_32 = arith.constant 2 : i32
    return
  }
  func.func @transform_0(%arg0: i32) -> (i32, i32, i32) {
    %c0_i32 = arith.constant 0 : i32
    %c0_i32_0 = arith.constant 0 : i32
    %c0_i32_1 = arith.constant 0 : i32
    return %c0_i32, %arg0, %c0_i32_0 : i32, i32, i32
  }
  func.func @transform_1(%arg0: i32) -> (i32, i32) {
    %c0_i32 = arith.constant 0 : i32
    %c0_i32_0 = arith.constant 0 : i32
    return %arg0, %c0_i32 : i32, i32
  }
  func.func @transform_2(%arg0: i32) -> (i32, i32) {
    %c0_i32 = arith.constant 0 : i32
    %c0_i32_0 = arith.constant 0 : i32
    return %arg0, %c0_i32 : i32, i32
  }
  func.func @transform_3(%arg0: i32) -> (i32, i32, i32) {
    %c0_i32 = arith.constant 0 : i32
    %c0_i32_0 = arith.constant 0 : i32
    %c0_i32_1 = arith.constant 0 : i32
    return %c0_i32, %arg0, %c0_i32_0 : i32, i32, i32
  }
}

</mosaic_0001>

<bundles_post_ra>
// kernel: tpu_custom_call.1
= control target key start
LH: loop header
LB: loop body
LE: loop exit
PB: predicated region body
PF: predicated region fallthrough
CT: control target
= control target key end

     0   :  { %8 = vsyncpa [#allocation3], 0  ;;  %s280_s0 = inlined_call_operand.hbm [shape: f32[2,4,256], index: 0, kind: input, shape index: {}]   ;;  %s281_s1 = inlined_call_operand.vmem [shape: f32[4,1], index: 1, kind: input, shape index: {}]   ;;  %s282_s2 = inlined_call_operand.vmem [shape: f32[4,1], index: 2, kind: input, shape index: {}]   ;;  %s283_s3 = inlined_call_operand.hbm [shape: f32[2,4,256], index: 3, kind: output, shape index: {}]  }
   0x1   :  { %9 = vsyncpa [#allocation4], 0  ;;  %s14_s14 = sshll.u32 %s280_s0, 4  ;;  %s218_s15 = smov [#allocation2]   ;;  %s15_s14 = int_to_ptr.hbm [resolvable:$true] %s14_s14 }
   0x2   :  { %s16_s16 = sshll.u32 %s218_s15, 4  ;;  %s219_s17 = smov 128   ;;  %s17_s16 = int_to_ptr.vmem [resolvable:$true] %s16_s16 }
   0x3   :  { %s220_s18 = smov 8  }
   0x4   :  { %22 = dma.hbm_to_vmem [thread:$0]  %s15_s14, 256, %s17_s16, [#allocation3], %s219_s17, %s219_s17, %s220_s18  }
   0x5   :  { %214 = dma.done.wait [#allocation3], 256  }
   0x6   :  { %215 = vsyncadd [#allocation3], 4294967040  ;;  %v250_v0 = vld [vmem:[#allocation2] sm:$0xff]  ;;  %vm38_vm0 = vcmask 1043456   ;;  %v253_v1 = vld [vmem:[#allocation2 + $0x8] sm:$0xff]  ;;  %v222_v34 = vmov 0  }
   0x7   :  { %33 = vst [vmem:[#allocation1] ss:$2 sm:$0xff] %v250_v0  ;;  %v221_v13 = vmov 839922192   ;;  %162 = vset.pattern.permute.xlu2 %v222_v34  ;;  %163 = vset.pattern.permute.xlu0 %v222_v34  ;;  %v106_v46 = vld [vmem:[%s281_s1] sm:$0xf] }
   0x8   :  { %v62_v14 = vunpack.c.l.s4 %v221_v13  ;;  %v108_v50 = vld [vmem:[%s282_s2] sm:$0xf]  ;;  %s223_s1 = smov [#allocation5]   ;;  %s143_s25 = sshll.u32 %s283_s3, 4  ;;  %s144_s25 = int_to_ptr.hbm [resolvable:$true] %s143_s25 }
   0x9   :  { %s141_s22 = sshll.u32 %s223_s1, 4  ;;  %s142_s22 = int_to_ptr.vmem [resolvable:$true] %s141_s22 }
   0xa   :  { %v63_v16 = vunpack.c.0.s8 %v62_v14 }
   0xe   :  { %v34_v2 = vld.sshfl [vmem:[#allocation1] sm:$0xff pattern:$0x75316420]  ;;  %v35_v3 = vld.sshfl [vmem:[#allocation1 + $0x8] sm:$0xff pattern:$0x75316420] }
   0xf   :  { %v39_v4 = vsel %vm38_vm0, %v34_v2, 0.0  ;;  %v40_v5 = vsel %vm38_vm0, %v35_v3, 0.0  ;;  %48 = vst [vmem:[#allocation1] ss:$2 sm:$0xff] %v253_v1 }
  0x10   :  { %v41_v6 = vadd.f32 %v40_v5, %v39_v4 }
  0x12   :  { %42 = vadd.xlane.f32.xlu0 %v41_v6 }
  0x16   :  { %v49_v7 = vld.sshfl [vmem:[#allocation1] sm:$0xff pattern:$0x75316420]  ;;  %v50_v8 = vld.sshfl [vmem:[#allocation1 + $0x8] sm:$0xff pattern:$0x75316420] }
  0x17   :  { %v53_v9 = vsel %vm38_vm0, %v49_v7, 0.0  ;;  %v54_v10 = vsel %vm38_vm0, %v50_v8, 0.0 }
  0x18   :  { %v55_v11 = vadd.f32 %v54_v10, %v53_v9 }
  0x1a   :  { %56 = vadd.xlane.f32.xlu0 %v55_v11 }
  0x85   :  { %v43_v12 = vpop.xlane.xlu0 %42 }
  0x8d   :  { %v57_v15 = vpop.xlane.xlu0 %56 }
  0x8e   :  { %v58_v17 = vadd.f32 %v57_v15, %v43_v12 }
  0x90   :  { %v59_v18 = vmul.f32 0.001953125, %v58_v17 }
  0x92   :  { %v64_v19 = vperm.slane %v59_v18, %v63_v16 }
  0x94   :  { %v66_v20 = vsub.f32 %v250_v0, %v64_v19  ;;  %v80_v22 = vsub.f32 %v253_v1, %v64_v19 }
  0x96   :  { %v67_v21 = vmul.f32 %v66_v20, %v66_v20  ;;  %v81_v23 = vmul.f32 %v80_v22, %v80_v22 }
  0x98   :  { %69 = vst [vmem:[#allocation1] ss:$2 sm:$0xff] %v67_v21 }
  0x9f   :  { %v70_v24 = vld.sshfl [vmem:[#allocation1] sm:$0xff pattern:$0x75316420]  ;;  %v71_v25 = vld.sshfl [vmem:[#allocation1 + $0x8] sm:$0xff pattern:$0x75316420] }
  0xa0   :  { %v74_v26 = vsel %vm38_vm0, %v70_v24, 0.0  ;;  %v75_v27 = vsel %vm38_vm0, %v71_v25, 0.0  ;;  %83 = vst [vmem:[#allocation1] ss:$2 sm:$0xff] %v81_v23 }
  0xa1   :  { %v76_v28 = vadd.f32 %v75_v27, %v74_v26 }
  0xa3   :  { %77 = vadd.xlane.f32.xlu1 %v76_v28 }
  0xa7   :  { %v84_v29 = vld.sshfl [vmem:[#allocation1] sm:$0xff pattern:$0x75316420]  ;;  %v85_v30 = vld.sshfl [vmem:[#allocation1 + $0x8] sm:$0xff pattern:$0x75316420] }
  0xa8   :  { %v88_v31 = vsel %vm38_vm0, %v84_v29, 0.0  ;;  %v89_v32 = vsel %vm38_vm0, %v85_v30, 0.0 }
  0xa9   :  { %v90_v33 = vadd.f32 %v89_v32, %v88_v31 }
  0xab   :  { %91 = vadd.xlane.f32.xlu1 %v90_v33 }
 0x116   :  { %v78_v35 = vpop.xlane.xlu1 %77 }
 0x11e   :  { %v92_v36 = vpop.xlane.xlu1 %91 }
 0x11f   :  { %v93_v37 = vadd.f32 %v92_v36, %v78_v35 }
 0x121   :  { %v94_v38 = vmul.f32 0.001953125, %v93_v37 }
 0x123   :  { %v95_v39 = vadd.f32 1e-05, %v94_v38 }
 0x125   :  { %164 = vrsqrt.f32 %v95_v39  ;;  %vm102_vm2 = vweird.f32 %v95_v39 }
 0x12b   :  { %v165_v40 = vpop.eup %164 }
 0x12c   :  { %v97_v41 = vmul.f32 %v165_v40, %v95_v39  ;;  %vm103_vm1 = vweird.f32 %v165_v40 }
 0x12d   :  { %vm104_vm3 = vmor %vm102_vm2, %vm103_vm1 }
 0x12e   :  { %v98_v42 = vmul.f32 %v165_v40, %v97_v41 }
 0x130   :  { %v99_v43 = vmul.f32 0.5, %v98_v42 }
 0x132   :  { %v100_v44 = vsub.f32 1.5, %v99_v43 }
 0x134   :  { %v101_v45 = vmul.f32 %v165_v40, %v100_v44 }
 0x136   :  { %v105_v47 = vsel %vm104_vm3, %v165_v40, %v101_v45 }
 0x137   :  { %v107_v48 = vmul.f32 %v106_v46, %v105_v47 }
 0x139   :  { %113 = vperm.xlu2 %162, %v107_v48   ;;  %v109_v49 = vmul.f32 %v107_v48, %v59_v18 }
 0x13b   :  { %v110_v51 = vsub.f32 %v108_v50, %v109_v49 }
 0x141   :  { %123 = vperm.xlu2 %162, %v110_v51  }
 0x193   :  { %v114_v52 = vpop.permute.xlu2 %113 }
 0x194   :  { %v118_v53 = vperm.slane %v114_v52, %v63_v16 }
 0x196   :  { %v120_v55 = vmul.f32 %v118_v53, %v250_v0  ;;  %v133_v56 = vmul.f32 %v118_v53, %v253_v1 }
 0x19b   :  { %v124_v54 = vpop.permute.xlu2 %123 }
 0x19c   :  { %v128_v57 = vperm.slane %v124_v54, %v63_v16 }
 0x19e   :  { %v130_v58 = vadd.f32 %v128_v57, %v120_v55  ;;  %v134_v59 = vadd.f32 %v133_v56, %v128_v57 }
 0x1a0   :  { %131 = vst [vmem:[#allocation5] sm:$0xff] %v130_v58 }
 0x1a1   :  { %136 = vst [vmem:[#allocation5 + $0x8] sm:$0xff] %v134_v59 }
 0x1a2   :  { %149 = dma.vmem_to_hbm [thread:$0]  %s142_s22, 256, %s144_s25, [#allocation4], %s219_s17, %s219_s17, %s220_s18  }
 0x1a3   :  { %216 = dma.done.wait [#allocation4], 256  }
 0x1a4   :  { %217 = vsyncadd [#allocation4], 4294967040 }
 0x1a5   :  { %154 = vsyncpa [#allocation3], 1 }
 0x1a6   :  { %155 = vsyncpa [#allocation4], 1 }

</bundles_post_ra>
